<compile_context>
chip_gen: v5e
topology: v5e:2x2
jax: 0.10.0
libtpu: 0.0.40
codegen_flags: <defaults>
</compile_context>

<pallas_src>
import jax
import jax.numpy as jnp
from jax.experimental import pallas as pl
from jax.experimental.pallas import tpu as pltpu

LANE = 128   # lane (last-dim) alignment; keep 128 for these toy hidden dims
SUB = 8      # f32 sublane alignment


# -----------------------------------------------------------------------------
# Padding helpers (plain JAX, outside the kernel)
# -----------------------------------------------------------------------------
def _rup(x, m):
    return ((x + m - 1) // m) * m


def _pad2(a, rows, cols):
    out = jnp.zeros((rows, cols), a.dtype)
    return out.at[: a.shape[0], : a.shape[1]].set(a)


# -----------------------------------------------------------------------------
# Fused forward: 3x GCNConv -> mean pool -> MLP (2 LinearBlocks + Linear)
# -----------------------------------------------------------------------------
def gcn_mlp_forward(params, x, a_hat, pool_mat):
    n, f_in = x.shape
    b = pool_mat.shape[0]
    h_conv = params["conv1_w"].shape[1]
    h_mlp = params["mlp1_w"].shape[1]
    out_dim = params["mlp3_w"].shape[1]

    f32 = jnp.float32

    # Padded (lane-dense / sublane-aligned) sizes; zero padding is inert.
    npad = _rup(n, LANE)                   # lane dim of A_hat/pool, sublane dim of X/H
    bpad = _rup(b, SUB)
    fpad = _rup(f_in, LANE)
    hpad = _rup(max(h_conv, h_mlp), LANE)  # shared hidden width (conv & MLP)
    opad = _rup(out_dim, LANE)
    vpad = max(hpad, opad)                 # packed row-vector slab width

    # ---- packed operands (7 arrays instead of 19) ---------------------------
    a_p = _pad2(a_hat.astype(f32), npad, npad)
    pool_p = _pad2(pool_mat.astype(f32), bpad, npad)
    x_p = _pad2(x.astype(f32), npad, fpad)
    w_in = _pad2(params["conv1_w"].astype(f32), fpad, hpad)
    w_sq = jnp.stack([
        _pad2(params["conv2_w"].astype(f32), hpad, hpad),
        _pad2(params["conv3_w"].astype(f32), hpad, hpad),
        _pad2(params["mlp1_w"].astype(f32), hpad, hpad),
        _pad2(params["mlp2_w"].astype(f32), hpad, hpad),
    ])
    w_out = _pad2(params["mlp3_w"].astype(f32), hpad, opad)

    vec_rows = [
        params["conv1_b"], params["conv2_b"], params["conv3_b"],
        params["mlp1_b"], params["bn1_scale"], params["bn1_shift"],
        params["mlp2_b"], params["bn2_scale"], params["bn2_shift"],
        params["mlp3_b"],
    ]
    vecs = jnp.zeros((16, vpad), f32)
    for i, v in enumerate(vec_rows):
        vecs = vecs.at[i, : v.shape[0]].set(v.astype(f32))

    args = (a_p, pool_p, x_p, w_in, w_sq, w_out, vecs)

    # ---- the fused kernel ----------------------------------------------------
    def kernel(a_ref, p_ref, x_ref, w_in_ref, w_sq_ref, w_out_ref, vec_ref, o_ref):
        a = a_ref[...]                               # [npad, npad] f32, loaded once

        def row(i, width):
            return vec_ref[i: i + 1, :width]         # (1, width) f32 broadcast row

        def gcn(h, w, bias, relu):
            # A_hat @ (H @ W) + b ; f32 MXU matmuls with f32 accumulation.
            xw = jnp.dot(h, w, preferred_element_type=jnp.float32)
            out = jnp.dot(a, xw, preferred_element_type=jnp.float32) + bias
            return jnp.maximum(out, 0.0) if relu else out

        h = gcn(x_ref[...], w_in_ref[...], row(0, hpad), relu=True)
        h = gcn(h, w_sq_ref[0], row(1, hpad), relu=True)
        h = gcn(h, w_sq_ref[1], row(2, hpad), relu=False)
        # NOTE: padded rows of h equal relu(bias) (0 @ W + b); harmless because
        # A_hat's and pool's padded columns are zero (mean pooling only).

        # global_mean_pool as a dense matmul: P [bpad, npad] @ H [npad, hpad]
        g = jnp.dot(p_ref[...], h, preferred_element_type=jnp.float32)

        # LinearBlock 1: bn(dropout(relu(linear(g)))) -- eval: dropout=identity,
        # BN folded into a per-feature scale/shift.
        z = jnp.dot(g, w_sq_ref[2], preferred_element_type=jnp.float32) + row(3, hpad)
        z = jnp.maximum(z, 0.0) * row(4, hpad) + row(5, hpad)
        # LinearBlock 2
        z = jnp.dot(z, w_sq_ref[3], preferred_element_type=jnp.float32) + row(6, hpad)
        z = jnp.maximum(z, 0.0) * row(7, hpad) + row(8, hpad)
        # Output Linear
        out = jnp.dot(z, w_out_ref[...], preferred_element_type=jnp.float32) + row(9, opad)
        o_ref[...] = out.astype(o_ref.dtype)

    # ---- cost / VMEM accounting ----------------------------------------------
    io_bytes = sum(int(arr.size) * arr.dtype.itemsize for arr in args)
    io_bytes += bpad * opad * 4                                       # output
    flops = 2 * (npad * fpad * hpad + npad * npad * hpad)             # conv1
    flops += 2 * 2 * (npad * hpad * hpad + npad * npad * hpad)        # conv2, conv3
    flops += 2 * bpad * npad * hpad                                   # mean pool
    flops += 2 * bpad * hpad * (2 * hpad + opad)                      # MLP
    # Actual footprint is tiny; give 4x headroom for in-kernel temps, cap 32 MiB.
    vmem_limit = int(min(32 * 1024 * 1024, max(2 * 1024 * 1024, 4 * io_bytes)))

    out_padded = pl.pallas_call(
        kernel,
        out_shape=jax.ShapeDtypeStruct((bpad, opad), f32),
        compiler_params=pltpu.CompilerParams(vmem_limit_bytes=vmem_limit),
        cost_estimate=pl.CostEstimate(
            flops=flops, transcendentals=0, bytes_accessed=io_bytes),
    )(*args)
    return out_padded[:b, :out_dim]


# -----------------------------------------------------------------------------
# Glue: graph preprocessing and parameter initialization (plain JAX)
# -----------------------------------------------------------------------------
def build_a_hat(edge_index, n):
    # GCNConv normalization: D^{-1/2} (A + I) D^{-1/2}
    adj = jnp.zeros((n, n), jnp.float32).at[edge_index[0], edge_index[1]].set(1.0)
    adj = adj + jnp.eye(n, dtype=jnp.float32)
    deg = adj.sum(axis=1)
    dinv = jax.lax.rsqrt(deg)
    return dinv[:, None] * adj * dinv[None, :]


def build_pool_matrix(batch, num_graphs):
    onehot = (batch[None, :] == jnp.arange(num_graphs)[:, None]).astype(jnp.float32)
    counts = jnp.maximum(onehot.sum(axis=1, keepdims=True), 1.0)
    return onehot / counts


def linear_params(key, in_dim, out_dim):
    # PyTorch nn.Linear-style uniform init; weight stored as [in, out].
    kw, kb = jax.random.split(key)
    bound = 1.0 / jnp.sqrt(float(in_dim))
    w = jax.random.uniform(kw, (in_dim, out_dim), jnp.float32, -bound, bound)
    b = jax.random.uniform(kb, (out_dim,), jnp.float32, -bound, bound)
    return w, b


def init_params(key, f_in, h_conv, h_mlp, out_dim):
    keys = jax.random.split(key, 6)
    p = {}
    p["conv1_w"], p["conv1_b"] = linear_params(keys[0], f_in, h_conv)
    p["conv2_w"], p["conv2_b"] = linear_params(keys[1], h_conv, h_conv)
    p["conv3_w"], p["conv3_b"] = linear_params(keys[2], h_conv, h_conv)
    p["mlp1_w"], p["mlp1_b"] = linear_params(keys[3], h_conv, h_mlp)
    p["mlp2_w"], p["mlp2_b"] = linear_params(keys[4], h_mlp, h_mlp)
    p["mlp3_w"], p["mlp3_b"] = linear_params(keys[5], h_mlp, out_dim)
    # BatchNorm1d (eval): gamma=1, beta=0, running_mean=0, running_var=1, eps=1e-5
    eps = 1e-5
    scale = jnp.full((h_mlp,), 1.0 / jnp.sqrt(1.0 + eps), jnp.float32)
    shift = jnp.zeros((h_mlp,), jnp.float32)
    p["bn1_scale"], p["bn1_shift"] = scale, shift
    p["bn2_scale"], p["bn2_shift"] = scale, shift
    return p


# -----------------------------------------------------------------------------
if __name__ == "__main__":
    # args: num_node_features=8, hidden_channels_conv=32, hidden_channels=32,
    #       num_assays=4, num_layers=2, dropout=0.1, model='GCN' (no fingerprints)
    N, F_IN, H_CONV, H_MLP, OUT_DIM, B = 16, 8, 32, 32, 4, 2

    key = jax.random.PRNGKey(0)
    k_x, k_p = jax.random.split(key)

    # node features
    x = jax.random.normal(k_x, (N, F_IN), jnp.float32)

    # simple undirected chain graph inside each of the B graphs
    src, dst = [], []
    per = N // B
    for g in range(B):
        base = g * per
        for i in range(per - 1):
            src += [base + i, base + i + 1]
            dst += [base + i + 1, base + i]
    edge_index = jnp.array([src, dst], dtype=jnp.int32)
    batch = jnp.repeat(jnp.arange(B, dtype=jnp.int32), per)

    a_hat = build_a_hat(edge_index, N)
    pool_mat = build_pool_matrix(batch, B)
    params = init_params(k_p, F_IN, H_CONV, H_MLP, OUT_DIM)

    out = gcn_mlp_forward(params, x, a_hat, pool_mat)
    out = jax.block_until_ready(out)
    assert out.shape == (B, OUT_DIM), out.shape
    assert bool(jnp.all(jnp.isfinite(out)))
    print("KERNEL_OK")
</pallas_src>

<mosaic_0001>
module attributes {stable_mosaic.version = 11 : i64} {
  func.func @kernel(%arg0: memref<128x128xf32, #tpu.memory_space<vmem>>, %arg1: memref<8x128xf32, #tpu.memory_space<vmem>>, %arg2: memref<128x128xf32, #tpu.memory_space<vmem>>, %arg3: memref<128x128xf32, #tpu.memory_space<vmem>>, %arg4: memref<4x128x128xf32, #tpu.memory_space<vmem>>, %arg5: memref<128x128xf32, #tpu.memory_space<vmem>>, %arg6: memref<16x128xf32, #tpu.memory_space<vmem>>, %arg7: memref<8x128xf32, #tpu.memory_space<vmem>>) attributes {dimension_semantics = [], scalar_prefetch = 0 : i64, scratch_operands = 0 : i64, tpu.core_type = #tpu.core_type<tc>} {
    %c0 = arith.constant 0 : index
    %c0_0 = arith.constant 0 : index
    %0 = vector.load %arg0[%c0, %c0_0] : memref<128x128xf32, #tpu.memory_space<vmem>>, vector<128x128xf32>
    %c0_1 = arith.constant 0 : index
    %c0_2 = arith.constant 0 : index
    %1 = vector.load %arg2[%c0_1, %c0_2] : memref<128x128xf32, #tpu.memory_space<vmem>>, vector<128x128xf32>
    %c0_3 = arith.constant 0 : index
    %c0_4 = arith.constant 0 : index
    %2 = vector.load %arg3[%c0_3, %c0_4] : memref<128x128xf32, #tpu.memory_space<vmem>>, vector<128x128xf32>
    %c0_5 = arith.constant 0 : index
    %c0_6 = arith.constant 0 : index
    %3 = vector.load %arg6[%c0_5, %c0_6] : memref<16x128xf32, #tpu.memory_space<vmem>>, vector<1x128xf32>
    %cst = arith.constant dense<0.000000e+00> : vector<128x128xf32>
    %4 = tpu.matmul %1, %2, %cst {dimension_numbers = #tpu.dot_dimension_numbers<[1], [0], [0], [1], [0, 0, 1, 1], [], []>} : vector<128x128xf32>, vector<128x128xf32>, vector<128x128xf32> -> vector<128x128xf32>
    %cst_7 = arith.constant dense<0.000000e+00> : vector<128x128xf32>
    %5 = tpu.matmul %0, %4, %cst_7 {dimension_numbers = #tpu.dot_dimension_numbers<[1], [0], [0], [1], [0, 0, 1, 1], [], []>} : vector<128x128xf32>, vector<128x128xf32>, vector<128x128xf32> -> vector<128x128xf32>
    %6 = vector.broadcast %3 : vector<1x128xf32> to vector<128x128xf32>
    %7 = arith.addf %5, %6 : vector<128x128xf32>
    %cst_8 = arith.constant 0.000000e+00 : f32
    %8 = vector.broadcast %cst_8 : f32 to vector<128x128xf32>
    %9 = arith.maximumf %7, %8 : vector<128x128xf32>
    %c0_9 = arith.constant 0 : index
    %c0_10 = arith.constant 0 : index
    %c0_11 = arith.constant 0 : index
    %10 = vector.load %arg4[%c0_9, %c0_10, %c0_11] : memref<4x128x128xf32, #tpu.memory_space<vmem>>, vector<1x128x128xf32>
    %11 = vector.shape_cast %10 : vector<1x128x128xf32> to vector<128x128xf32>
    %c1 = arith.constant 1 : index
    %c0_12 = arith.constant 0 : index
    %12 = vector.load %arg6[%c1, %c0_12] : memref<16x128xf32, #tpu.memory_space<vmem>>, vector<1x128xf32>
    %cst_13 = arith.constant dense<0.000000e+00> : vector<128x128xf32>
    %13 = tpu.matmul %9, %11, %cst_13 {dimension_numbers = #tpu.dot_dimension_numbers<[1], [0], [0], [1], [0, 0, 1, 1], [], []>} : vector<128x128xf32>, vector<128x128xf32>, vector<128x128xf32> -> vector<128x128xf32>
    %cst_14 = arith.constant dense<0.000000e+00> : vector<128x128xf32>
    %14 = tpu.matmul %0, %13, %cst_14 {dimension_numbers = #tpu.dot_dimension_numbers<[1], [0], [0], [1], [0, 0, 1, 1], [], []>} : vector<128x128xf32>, vector<128x128xf32>, vector<128x128xf32> -> vector<128x128xf32>
    %15 = vector.broadcast %12 : vector<1x128xf32> to vector<128x128xf32>
    %16 = arith.addf %14, %15 : vector<128x128xf32>
    %cst_15 = arith.constant 0.000000e+00 : f32
    %17 = vector.broadcast %cst_15 : f32 to vector<128x128xf32>
    %18 = arith.maximumf %16, %17 : vector<128x128xf32>
    %c1_16 = arith.constant 1 : index
    %c0_17 = arith.constant 0 : index
    %c0_18 = arith.constant 0 : index
    %19 = vector.load %arg4[%c1_16, %c0_17, %c0_18] : memref<4x128x128xf32, #tpu.memory_space<vmem>>, vector<1x128x128xf32>
    %20 = vector.shape_cast %19 : vector<1x128x128xf32> to vector<128x128xf32>
    %c2 = arith.constant 2 : index
    %c0_19 = arith.constant 0 : index
    %21 = vector.load %arg6[%c2, %c0_19] : memref<16x128xf32, #tpu.memory_space<vmem>>, vector<1x128xf32>
    %cst_20 = arith.constant dense<0.000000e+00> : vector<128x128xf32>
    %22 = tpu.matmul %18, %20, %cst_20 {dimension_numbers = #tpu.dot_dimension_numbers<[1], [0], [0], [1], [0, 0, 1, 1], [], []>} : vector<128x128xf32>, vector<128x128xf32>, vector<128x128xf32> -> vector<128x128xf32>
    %cst_21 = arith.constant dense<0.000000e+00> : vector<128x128xf32>
    %23 = tpu.matmul %0, %22, %cst_21 {dimension_numbers = #tpu.dot_dimension_numbers<[1], [0], [0], [1], [0, 0, 1, 1], [], []>} : vector<128x128xf32>, vector<128x128xf32>, vector<128x128xf32> -> vector<128x128xf32>
    %24 = vector.broadcast %21 : vector<1x128xf32> to vector<128x128xf32>
    %25 = arith.addf %23, %24 : vector<128x128xf32>
    %c0_22 = arith.constant 0 : index
    %c0_23 = arith.constant 0 : index
    %26 = vector.load %arg1[%c0_22, %c0_23] : memref<8x128xf32, #tpu.memory_space<vmem>>, vector<8x128xf32>
    %cst_24 = arith.constant dense<0.000000e+00> : vector<8x128xf32>
    %27 = tpu.matmul %26, %25, %cst_24 {dimension_numbers = #tpu.dot_dimension_numbers<[1], [0], [0], [1], [0, 0, 1, 1], [], []>} : vector<8x128xf32>, vector<128x128xf32>, vector<8x128xf32> -> vector<8x128xf32>
    %c2_25 = arith.constant 2 : index
    %c0_26 = arith.constant 0 : index
    %c0_27 = arith.constant 0 : index
    %28 = vector.load %arg4[%c2_25, %c0_26, %c0_27] : memref<4x128x128xf32, #tpu.memory_space<vmem>>, vector<1x128x128xf32>
    %29 = vector.shape_cast %28 : vector<1x128x128xf32> to vector<128x128xf32>
    %cst_28 = arith.constant dense<0.000000e+00> : vector<8x128xf32>
    %30 = tpu.matmul %27, %29, %cst_28 {dimension_numbers = #tpu.dot_dimension_numbers<[1], [0], [0], [1], [0, 0, 1, 1], [], []>} : vector<8x128xf32>, vector<128x128xf32>, vector<8x128xf32> -> vector<8x128xf32>
    %c3 = arith.constant 3 : index
    %c0_29 = arith.constant 0 : index
    %31 = vector.load %arg6[%c3, %c0_29] : memref<16x128xf32, #tpu.memory_space<vmem>>, vector<1x128xf32>
    %32 = vector.broadcast %31 : vector<1x128xf32> to vector<8x128xf32>
    %33 = arith.addf %30, %32 : vector<8x128xf32>
    %cst_30 = arith.constant 0.000000e+00 : f32
    %34 = vector.broadcast %cst_30 : f32 to vector<8x128xf32>
    %35 = arith.maximumf %33, %34 : vector<8x128xf32>
    %c4 = arith.constant 4 : index
    %c0_31 = arith.constant 0 : index
    %36 = vector.load %arg6[%c4, %c0_31] : memref<16x128xf32, #tpu.memory_space<vmem>>, vector<1x128xf32>
    %37 = vector.broadcast %36 : vector<1x128xf32> to vector<8x128xf32>
    %38 = arith.mulf %35, %37 : vector<8x128xf32>
    %c5 = arith.constant 5 : index
    %c0_32 = arith.constant 0 : index
    %39 = vector.load %arg6[%c5, %c0_32] : memref<16x128xf32, #tpu.memory_space<vmem>>, vector<1x128xf32>
    %40 = vector.broadcast %39 : vector<1x128xf32> to vector<8x128xf32>
    %41 = arith.addf %38, %40 : vector<8x128xf32>
    %c3_33 = arith.constant 3 : index
    %c0_34 = arith.constant 0 : index
    %c0_35 = arith.constant 0 : index
    %42 = vector.load %arg4[%c3_33, %c0_34, %c0_35] : memref<4x128x128xf32, #tpu.memory_space<vmem>>, vector<1x128x128xf32>
    %43 = vector.shape_cast %42 : vector<1x128x128xf32> to vector<128x128xf32>
    %cst_36 = arith.constant dense<0.000000e+00> : vector<8x128xf32>
    %44 = tpu.matmul %41, %43, %cst_36 {dimension_numbers = #tpu.dot_dimension_numbers<[1], [0], [0], [1], [0, 0, 1, 1], [], []>} : vector<8x128xf32>, vector<128x128xf32>, vector<8x128xf32> -> vector<8x128xf32>
    %c6 = arith.constant 6 : index
    %c0_37 = arith.constant 0 : index
    %45 = vector.load %arg6[%c6, %c0_37] : memref<16x128xf32, #tpu.memory_space<vmem>>, vector<1x128xf32>
    %46 = vector.broadcast %45 : vector<1x128xf32> to vector<8x128xf32>
    %47 = arith.addf %44, %46 : vector<8x128xf32>
    %cst_38 = arith.constant 0.000000e+00 : f32
    %48 = vector.broadcast %cst_38 : f32 to vector<8x128xf32>
    %49 = arith.maximumf %47, %48 : vector<8x128xf32>
    %c7 = arith.constant 7 : index
    %c0_39 = arith.constant 0 : index
    %50 = vector.load %arg6[%c7, %c0_39] : memref<16x128xf32, #tpu.memory_space<vmem>>, vector<1x128xf32>
    %51 = vector.broadcast %50 : vector<1x128xf32> to vector<8x128xf32>
    %52 = arith.mulf %49, %51 : vector<8x128xf32>
    %c8 = arith.constant 8 : index
    %c0_40 = arith.constant 0 : index
    %53 = vector.load %arg6[%c8, %c0_40] : memref<16x128xf32, #tpu.memory_space<vmem>>, vector<1x128xf32>
    %54 = vector.broadcast %53 : vector<1x128xf32> to vector<8x128xf32>
    %55 = arith.addf %52, %54 : vector<8x128xf32>
    %c0_41 = arith.constant 0 : index
    %c0_42 = arith.constant 0 : index
    %56 = vector.load %arg5[%c0_41, %c0_42] : memref<128x128xf32, #tpu.memory_space<vmem>>, vector<128x128xf32>
    %cst_43 = arith.constant dense<0.000000e+00> : vector<8x128xf32>
    %57 = tpu.matmul %55, %56, %cst_43 {dimension_numbers = #tpu.dot_dimension_numbers<[1], [0], [0], [1], [0, 0, 1, 1], [], []>} : vector<8x128xf32>, vector<128x128xf32>, vector<8x128xf32> -> vector<8x128xf32>
    %c9 = arith.constant 9 : index
    %c0_44 = arith.constant 0 : index
    %58 = vector.load %arg6[%c9, %c0_44] : memref<16x128xf32, #tpu.memory_space<vmem>>, vector<1x128xf32>
    %59 = vector.broadcast %58 : vector<1x128xf32> to vector<8x128xf32>
    %60 = arith.addf %57, %59 : vector<8x128xf32>
    %c0_45 = arith.constant 0 : index
    %c0_46 = arith.constant 0 : index
    %61 = vector.load %arg7[%c0_45, %c0_46] : memref<8x128xf32, #tpu.memory_space<vmem>>, vector<8x128xf32>
    tpu.vector_store %arg7[%c0_45, %c0_46], %60 {strides = array<i32>} : memref<8x128xf32, #tpu.memory_space<vmem>>, vector<8x128xf32>,
    return
  }
}

</mosaic_0001>

<bundles_post_ra>
// kernel: tpu_custom_call.1
= control target key start
LH: loop header
LB: loop body
LE: loop exit
PB: predicated region body
PF: predicated region fallthrough
CT: control target
= control target key end

     0   :  { %12 = vsyncpa [#allocation3], 0  ;;  %s1250_s0 = inlined_call_operand.hbm [shape: f32[128,128], index: 0, kind: input, shape index: {}]   ;;  %s1251_s1 = inlined_call_operand.hbm [shape: f32[8,128], index: 1, kind: input, shape index: {}]   ;;  %s1252_s2 = inlined_call_operand.hbm [shape: f32[128,128], index: 2, kind: input, shape index: {}]   ;;  %s1253_s3 = inlined_call_operand.hbm [shape: f32[128,128], index: 3, kind: input, shape index: {}]   ;;  %s1254_s4 = inlined_call_operand.hbm [shape: f32[4,128,128], index: 4, kind: input, shape index: {}]   ;;  %s1255_s5 = inlined_call_operand.hbm [shape: f32[128,128], index: 5, kind: input, shape index: {}]   ;;  %s1256_s6 = inlined_call_operand.hbm [shape: f32[16,128], index: 6, kind: input, shape index: {}]   ;;  %s1257_s7 = inlined_call_operand.hbm [shape: f32[8,128], index: 7, kind: output, shape index: {}]  }
   0x1   :  { %13 = vsyncpa [#allocation6], 0 }
   0x2   :  { %14 = vsyncpa [#allocation9], 0 }
   0x3   :  { %15 = vsyncpa [#allocation12], 0  ;;  %s35_s26 = sshll.u32 %s1251_s1, 4  ;;  %s36_s26 = int_to_ptr.hbm [resolvable:$true] %s35_s26 }
   0x4   :  { %16 = vsyncpa [#allocation4], 0  ;;  %s1069_s27 = smov [#allocation5]   ;;  %s58_s8 = sshll.u32 %s1253_s3, 4  ;;  %s59_s8 = int_to_ptr.hbm [resolvable:$true] %s58_s8 }
   0x5   :  { %s37_s28 = sshll.u32 %s1069_s27, 4  ;;  %s1070_s9 = smov [#allocation8]   ;;  %s38_s28 = int_to_ptr.vmem [resolvable:$true] %s37_s28 }
   0x6   :  { %40 = dma.hbm_to_vmem [thread:$0]  %s36_s26, 128, %s38_s28, [#allocation6]  }
   0x7   :  { %s60_s10 = sshll.u32 %s1070_s9, 4  ;;  %s84_s13 = sshll.u32 %s1255_s5, 4  ;;  %s61_s10 = int_to_ptr.vmem [resolvable:$true] %s60_s10  ;;  %s85_s13 = int_to_ptr.hbm [resolvable:$true] %s84_s13 }
   0x8   :  { %s1071_s1 = smov 128   ;;  %s1072_s14 = smov 8  }
   0x9   :  { %66 = dma.hbm_to_vmem [thread:$0]  %s59_s8, 2048, %s61_s10, [#allocation9], %s1071_s1, %s1071_s1, %s1072_s14  }
   0xa   :  { %s21_s17 = sshll.u32 %s1250_s0, 4  ;;  %s1073_s3 = smov [#allocation11]   ;;  %s22_s17 = int_to_ptr.hbm [resolvable:$true] %s21_s17 }
   0xb   :  { %s86_s18 = sshll.u32 %s1073_s3, 4  ;;  %s1074_s5 = smov [#allocation2]   ;;  %s87_s18 = int_to_ptr.vmem [resolvable:$true] %s86_s18 }
   0xc   :  { %92 = dma.hbm_to_vmem [thread:$0]  %s85_s13, 2048, %s87_s18, [#allocation12], %s1071_s1, %s1071_s1, %s1072_s14  }
   0xd   :  { %s23_s19 = sshll.u32 %s1074_s5, 4  ;;  %s45_s22 = sshll.u32 %s1252_s2, 4  ;;  %s24_s19 = int_to_ptr.vmem [resolvable:$true] %s23_s19  ;;  %s46_s22 = int_to_ptr.hbm [resolvable:$true] %s45_s22 }
   0xe   :  { %29 = dma.hbm_to_vmem [thread:$0]  %s22_s17, 2048, %s24_s19, [#allocation3], %s1071_s1, %s1071_s1, %s1072_s14  }
   0xf   :  { %s71_s24 = sshll.u32 %s1254_s4, 4  ;;  %s1075_s25 = smov [#allocation7]   ;;  %s72_s24 = int_to_ptr.hbm [resolvable:$true] %s71_s24 }
  0x10   :  { %s47_s26 = sshll.u32 %s1075_s25, 4  ;;  %s1076_s27 = smov [#allocation10]   ;;  %s48_s26 = int_to_ptr.vmem [resolvable:$true] %s47_s26 }
  0x11   :  { %53 = dma.hbm_to_vmem [thread:$0]  %s46_s22, 2048, %s48_s26, [#allocation6], %s1071_s1, %s1071_s1, %s1072_s14  }
  0x12   :  { %s73_s2 = sshll.u32 %s1076_s27, 4  ;;  %s97_s30 = sshll.u32 %s1256_s6, 4  ;;  %s74_s2 = int_to_ptr.vmem [resolvable:$true] %s73_s2  ;;  %s98_s30 = int_to_ptr.hbm [resolvable:$true] %s97_s30 }
  0x13   :  { %79 = dma.hbm_to_vmem [thread:$0]  %s72_s24, 8192, %s74_s2, [#allocation9], %s1071_s1, %s1071_s1, %s1072_s14  }
  0x14   :  { %s1077_s4 = smov [#allocation13]  }
  0x15   :  { %s99_s8 = sshll.u32 %s1077_s4, 4  ;;  %s100_s8 = int_to_ptr.vmem [resolvable:$true] %s99_s8 }
  0x16   :  { %105 = dma.hbm_to_vmem [thread:$0]  %s98_s30, 256, %s100_s8, [#allocation12], %s1071_s1, %s1071_s1, %s1072_s14  }
  0x17   :  { %1059 = dma.done.wait [#allocation3], 2048  }
  0x18   :  { %1060 = vsyncadd [#allocation3], 4294965248 }
  0x19   :  { %1061 = dma.done.wait [#allocation6], 2176  }
  0x1a   :  { %1062 = vsyncadd [#allocation6], 4294965120 }
  0x1b   :  { %1063 = dma.done.wait [#allocation9], 10240  }
  0x1c   :  { %1064 = vsyncadd [#allocation9], 4294957056 }
  0x1d   :  { %1065 = dma.done.wait [#allocation12], 2304  }
  0x1e   :  { %1066 = vsyncadd [#allocation12], 4294964992  ;;  %v181_v0 = vld [vmem:[#allocation8 + $0x78] sm:$0xff]  ;;  %v180_v1 = vld [vmem:[#allocation8 + $0x70] sm:$0xff]  ;;  %s1078_s6 = smov [#allocation14]   ;;  %s802_s12 = sshll.u32 %s1257_s7, 4  ;;  %s803_s12 = int_to_ptr.hbm [resolvable:$true] %s802_s12 }
  0x1f   :  { %183 = vmatpush.msra.mxu0 %v181_v0  ;;  %815 = vmatpush.msra.mxu2 %v181_v0  ;;  %v179_v2 = vld [vmem:[#allocation8 + $0x68] sm:$0xff]  ;;  %v178_v3 = vld [vmem:[#allocation8 + $0x60] sm:$0xff]  ;;  %v177_v4 = vld [vmem:[#allocation8 + $0x58] sm:$0xff]  ;;  %s800_s9 = sshll.u32 %s1078_s6, 4  ;;  %s801_s9 = int_to_ptr.vmem [resolvable:$true] %s800_s9 }
  0x20   :  { %v176_v5 = vld [vmem:[#allocation8 + $0x50] sm:$0xff]  ;;  %v175_v6 = vld [vmem:[#allocation8 + $0x48] sm:$0xff]  ;;  %v174_v7 = vld [vmem:[#allocation8 + $0x40] sm:$0xff] }
  0x21   :  { %184 = vmatpush.msra.mxu0 %v180_v1  ;;  %816 = vmatpush.msra.mxu2 %v180_v1  ;;  %v173_v8 = vld [vmem:[#allocation8 + $0x38] sm:$0xff]  ;;  %v172_v9 = vld [vmem:[#allocation8 + $0x30] sm:$0xff]  ;;  %v171_v10 = vld [vmem:[#allocation8 + $0x28] sm:$0xff] }
  0x22   :  { %v170_v11 = vld [vmem:[#allocation8 + $0x20] sm:$0xff]  ;;  %v169_v12 = vld [vmem:[#allocation8 + $0x18] sm:$0xff]  ;;  %v168_v13 = vld [vmem:[#allocation8 + $0x10] sm:$0xff] }
  0x23   :  { %185 = vmatpush.msra.mxu0 %v179_v2  ;;  %817 = vmatpush.msra.mxu2 %v179_v2  ;;  %v167_v14 = vld [vmem:[#allocation8 + $0x8] sm:$0xff]  ;;  %v166_v15 = vld [vmem:[#allocation8] sm:$0xff]  ;;  %v161_v17 = vld [vmem:[#allocation7 + $0x58] sm:$0xff] }
  0x24   :  { %v150_v16 = vld [vmem:[#allocation7] sm:$0xff]  ;;  %v151_v18 = vld [vmem:[#allocation7 + $0x8] sm:$0xff]  ;;  %v152_v20 = vld [vmem:[#allocation7 + $0x10] sm:$0xff] }
  0x25   :  { %186 = vmatpush.msra.mxu0 %v178_v3  ;;  %818 = vmatpush.msra.mxu2 %v178_v3  ;;  %v162_v19 = vld [vmem:[#allocation7 + $0x60] sm:$0xff]  ;;  %v163_v21 = vld [vmem:[#allocation7 + $0x68] sm:$0xff]  ;;  %v153_v22 = vld [vmem:[#allocation7 + $0x18] sm:$0xff] }
  0x26   :  { %v164_v23 = vld [vmem:[#allocation7 + $0x70] sm:$0xff]  ;;  %v154_v24 = vld [vmem:[#allocation7 + $0x20] sm:$0xff]  ;;  %v165_v25 = vld [vmem:[#allocation7 + $0x78] sm:$0xff] }
  0x27   :  { %187 = vmatpush.msra.mxu0 %v177_v4  ;;  %819 = vmatpush.msra.mxu2 %v177_v4  ;;  %v155_v26 = vld [vmem:[#allocation7 + $0x28] sm:$0xff]  ;;  %v156_v27 = vld [vmem:[#allocation7 + $0x30] sm:$0xff]  ;;  %v157_v28 = vld [vmem:[#allocation7 + $0x38] sm:$0xff] }
  0x28   :  { %v158_v29 = vld [vmem:[#allocation7 + $0x40] sm:$0xff]  ;;  %v159_v30 = vld [vmem:[#allocation7 + $0x48] sm:$0xff]  ;;  %v160_v31 = vld [vmem:[#allocation7 + $0x50] sm:$0xff] }
  0x29   :  { %188 = vmatpush.msra.mxu0 %v176_v5  ;;  %820 = vmatpush.msra.mxu2 %v176_v5  ;;  %v1158_v48 = vld [vmem:[#allocation2] sm:$0xff]  ;;  %v1161_v49 = vld [vmem:[#allocation2 + $0x8] sm:$0xff]  ;;  %v1164_v50 = vld [vmem:[#allocation2 + $0x10] sm:$0xff] }
  0x2a   :  { %v1167_v51 = vld [vmem:[#allocation2 + $0x18] sm:$0xff]  ;;  %v1170_v52 = vld [vmem:[#allocation2 + $0x20] sm:$0xff]  ;;  %v1173_v53 = vld [vmem:[#allocation2 + $0x28] sm:$0xff] }
  0x2b   :  { %189 = vmatpush.msra.mxu0 %v175_v6  ;;  %821 = vmatpush.msra.mxu2 %v175_v6  ;;  %v1176_v54 = vld [vmem:[#allocation2 + $0x30] sm:$0xff]  ;;  %v1179_v55 = vld [vmem:[#allocation2 + $0x58] sm:$0xff]  ;;  %v345_v56 = vld [vmem:[#allocation10 + $0x78] sm:$0xff] }
  0x2c   :  { %v344_v57 = vld [vmem:[#allocation10 + $0x70] sm:$0xff]  ;;  %v343_v58 = vld [vmem:[#allocation10 + $0x68] sm:$0xff]  ;;  %v342_v60 = vld [vmem:[#allocation10 + $0x60] sm:$0xff] }
  0x2d   :  { %190 = vmatpush.msra.mxu0 %v174_v7  ;;  %822 = vmatpush.msra.mxu2 %v174_v7  ;;  %v1182_v59 = vld [vmem:[#allocation2 + $0x38] sm:$0xff]  ;;  %v1184_v61 = vld [vmem:[#allocation2 + $0x60] sm:$0xff]  ;;  %v339_v0 = vld [vmem:[#allocation10 + $0x48] sm:$0xff] }
  0x2e   :  { %v341_v62 = vld [vmem:[#allocation10 + $0x58] sm:$0xff]  ;;  %v340_v63 = vld [vmem:[#allocation10 + $0x50] sm:$0xff]  ;;  %v338_v2 = vld [vmem:[#allocation10 + $0x40] sm:$0xff] }
  0x2f   :  { %191 = vmatpush.msra.mxu0 %v173_v8  ;;  %823 = vmatpush.msra.mxu2 %v173_v8  ;;  %v1188_v1 = vld [vmem:[#allocation2 + $0x40] sm:$0xff]  ;;  %v1190_v3 = vld [vmem:[#allocation2 + $0x68] sm:$0xff]  ;;  %v336_v5 = vld [vmem:[#allocation10 + $0x30] sm:$0xff] }
  0x30   :  { %v337_v4 = vld [vmem:[#allocation10 + $0x38] sm:$0xff]  ;;  %v335_v6 = vld [vmem:[#allocation10 + $0x28] sm:$0xff]  ;;  %v1194_v7 = vld [vmem:[#allocation2 + $0x48] sm:$0xff] }
  0x31   :  { %192 = vmatpush.msra.mxu0 %v172_v9  ;;  %824 = vmatpush.msra.mxu2 %v172_v9  ;;  %v334_v8 = vld [vmem:[#allocation10 + $0x20] sm:$0xff]  ;;  %v1196_v9 = vld [vmem:[#allocation2 + $0x70] sm:$0xff] }
  0x33   :  { %193 = vmatpush.msra.mxu0 %v171_v10  ;;  %825 = vmatpush.msra.mxu2 %v171_v10  ;;  %v333_v10 = vld [vmem:[#allocation10 + $0x18] sm:$0xff] }
  0x35   :  { %194 = vmatpush.msra.mxu0 %v170_v11  ;;  %826 = vmatpush.msra.mxu2 %v170_v11  ;;  %v1200_v11 = vld [vmem:[#allocation2 + $0x50] sm:$0xff] }
  0x37   :  { %195 = vmatpush.msra.mxu0 %v169_v12  ;;  %827 = vmatpush.msra.mxu2 %v169_v12  ;;  %v1202_v12 = vld [vmem:[#allocation2 + $0x78] sm:$0xff] }
  0x39   :  { %196 = vmatpush.msra.mxu0 %v168_v13  ;;  %828 = vmatpush.msra.mxu2 %v168_v13  ;;  %v332_v13 = vld [vmem:[#allocation10 + $0x10] sm:$0xff] }
  0x3b   :  { %197 = vmatpush.msra.mxu0 %v167_v14  ;;  %829 = vmatpush.msra.mxu2 %v167_v14  ;;  %v331_v14 = vld [vmem:[#allocation10 + $0x8] sm:$0xff] }
  0x3d   :  { %198 = vmatpush.msra.mxu0 %v166_v15  ;;  %830 = vmatpush.msra.mxu2 %v166_v15  ;;  %v330_v15 = vld [vmem:[#allocation10] sm:$0xff] }
  0x3e   :  { %199 = vmatmul.f32.vlgmr.msra.gmra.mxu0 %v150_v16  ;;  %232 = vmatmul.f32.vlgmr.msra.gmra.mxu2 %v161_v17  ;;  %v857_v16 = vld [vmem:[#allocation13] ss:$0 sm:$0xff] }
  0x3f   :  { %347 = vmatpush.msrb.mxu2 %v345_v56 }
  0x41   :  { %348 = vmatpush.msrb.mxu2 %v344_v57 }
  0x43   :  { %349 = vmatpush.msrb.mxu2 %v343_v58 }
  0x45   :  { %350 = vmatpush.msrb.mxu2 %v342_v60 }
  0x46   :  { %202 = vmatmul.f32.gmra.mxu0 %v151_v18  ;;  %235 = vmatmul.f32.gmra.mxu2 %v162_v19 }
  0x47   :  { %351 = vmatpush.msrb.mxu2 %v341_v62 }
  0x49   :  { %352 = vmatpush.msrb.mxu2 %v340_v63 }
  0x4b   :  { %353 = vmatpush.msrb.mxu2 %v339_v0 }
  0x4d   :  { %354 = vmatpush.msrb.mxu2 %v338_v2 }
  0x4e   :  { %205 = vmatmul.f32.gmra.mxu0 %v152_v20  ;;  %238 = vmatmul.f32.gmra.mxu2 %v163_v21 }
  0x4f   :  { %355 = vmatpush.msrb.mxu2 %v337_v4 }
  0x51   :  { %356 = vmatpush.msrb.mxu2 %v336_v5 }
  0x53   :  { %357 = vmatpush.msrb.mxu2 %v335_v6 }
  0x55   :  { %358 = vmatpush.msrb.mxu2 %v334_v8 }
  0x56   :  { %208 = vmatmul.f32.gmra.mxu0 %v153_v22  ;;  %241 = vmatmul.f32.gmra.mxu2 %v164_v23 }
  0x57   :  { %359 = vmatpush.msrb.mxu2 %v333_v10 }
  0x59   :  { %360 = vmatpush.msrb.mxu2 %v332_v13 }
  0x5b   :  { %361 = vmatpush.msrb.mxu2 %v331_v14 }
  0x5d   :  { %362 = vmatpush.msrb.mxu2 %v330_v15 }
  0x5e   :  { %211 = vmatmul.f32.gmra.mxu0 %v154_v24  ;;  %244 = vmatmul.f32.gmra.mxu2 %v165_v25 }
  0x66   :  { %214 = vmatmul.f32.gmra.mxu0 %v155_v26 }
  0x6e   :  { %217 = vmatmul.f32.gmra.mxu0 %v156_v27 }
  0x76   :  { %220 = vmatmul.f32.gmra.mxu0 %v157_v28 }
  0x7e   :  { %223 = vmatmul.f32.gmra.mxu0 %v158_v29 }
  0x86   :  { %226 = vmatmul.f32.gmra.mxu0 %v159_v30 }
  0x8e   :  { %229 = vmatmul.f32.gmra.mxu0 %v160_v31 }
  0xbb   :  { %v200_v32 = vpop.f32.mrf.mxu0 }
  0xc1   :  { %v233_v33 = vpop.f32.mrf.mxu2 }
  0xc3   :  { %v203_v34 = vpop.f32.mrf.mxu0 }
  0xc9   :  { %v236_v35 = vpop.f32.mrf.mxu2 }
  0xcb   :  { %v206_v36 = vpop.f32.mrf.mxu0 }
  0xd1   :  { %v239_v37 = vpop.f32.mrf.mxu2 }
  0xd3   :  { %v209_v38 = vpop.f32.mrf.mxu0 }
  0xd9   :  { %v242_v39 = vpop.f32.mrf.mxu2 }
  0xdb   :  { %v212_v40 = vpop.f32.mrf.mxu0 }
  0xe1   :  { %v245_v41 = vpop.f32.mrf.mxu2 }
  0xe2   :  { %249 = vmatpush.msra.mxu1 %v245_v41  ;;  %831 = vmatpush.msra.mxu3 %v245_v41 }
  0xe3   :  { %v215_v42 = vpop.f32.mrf.mxu0 }
  0xe4   :  { %250 = vmatpush.msra.mxu1 %v242_v39  ;;  %832 = vmatpush.msra.mxu3 %v242_v39 }
  0xe6   :  { %251 = vmatpush.msra.mxu1 %v239_v37  ;;  %833 = vmatpush.msra.mxu3 %v239_v37 }
  0xe8   :  { %252 = vmatpush.msra.mxu1 %v236_v35  ;;  %834 = vmatpush.msra.mxu3 %v236_v35 }
  0xea   :  { %253 = vmatpush.msra.mxu1 %v233_v33  ;;  %835 = vmatpush.msra.mxu3 %v233_v33 }
  0xeb   :  { %v218_v43 = vpop.f32.mrf.mxu0 }
  0xf3   :  { %v221_v44 = vpop.f32.mrf.mxu0 }
  0xfb   :  { %v224_v45 = vpop.f32.mrf.mxu0 }
 0x103   :  { %v227_v46 = vpop.f32.mrf.mxu0 }
 0x10b   :  { %v230_v47 = vpop.f32.mrf.mxu0 }
 0x10c   :  { %254 = vmatpush.msra.mxu1 %v230_v47  ;;  %836 = vmatpush.msra.mxu3 %v230_v47 }
 0x10e   :  { %255 = vmatpush.msra.mxu1 %v227_v46  ;;  %837 = vmatpush.msra.mxu3 %v227_v46 }
 0x110   :  { %256 = vmatpush.msra.mxu1 %v224_v45  ;;  %838 = vmatpush.msra.mxu3 %v224_v45 }
 0x112   :  { %257 = vmatpush.msra.mxu1 %v221_v44  ;;  %839 = vmatpush.msra.mxu3 %v221_v44 }
 0x114   :  { %258 = vmatpush.msra.mxu1 %v218_v43  ;;  %840 = vmatpush.msra.mxu3 %v218_v43 }
 0x116   :  { %259 = vmatpush.msra.mxu1 %v215_v42  ;;  %841 = vmatpush.msra.mxu3 %v215_v42 }
 0x118   :  { %260 = vmatpush.msra.mxu1 %v212_v40  ;;  %842 = vmatpush.msra.mxu3 %v212_v40 }
 0x11a   :  { %261 = vmatpush.msra.mxu1 %v209_v38  ;;  %843 = vmatpush.msra.mxu3 %v209_v38 }
 0x11c   :  { %262 = vmatpush.msra.mxu1 %v206_v36  ;;  %844 = vmatpush.msra.mxu3 %v206_v36 }
 0x11e   :  { %263 = vmatpush.msra.mxu1 %v203_v34  ;;  %845 = vmatpush.msra.mxu3 %v203_v34 }
 0x120   :  { %264 = vmatpush.msra.mxu1 %v200_v32  ;;  %846 = vmatpush.msra.mxu3 %v200_v32 }
 0x121   :  { %265 = vmatmul.f32.vlgmr.msra.gmra.mxu1 %v1158_v48  ;;  %298 = vmatmul.f32.vlgmr.msra.gmra.mxu3 %v1179_v55 }
 0x129   :  { %268 = vmatmul.f32.gmra.mxu1 %v1161_v49  ;;  %301 = vmatmul.f32.gmra.mxu3 %v1184_v61 }
 0x131   :  { %271 = vmatmul.f32.gmra.mxu1 %v1164_v50  ;;  %304 = vmatmul.f32.gmra.mxu3 %v1190_v3 }
 0x139   :  { %274 = vmatmul.f32.gmra.mxu1 %v1167_v51  ;;  %307 = vmatmul.f32.gmra.mxu3 %v1196_v9 }
 0x141   :  { %277 = vmatmul.f32.gmra.mxu1 %v1170_v52  ;;  %310 = vmatmul.f32.gmra.mxu3 %v1202_v12 }
 0x149   :  { %280 = vmatmul.f32.gmra.mxu1 %v1173_v53 }
 0x151   :  { %283 = vmatmul.f32.gmra.mxu1 %v1176_v54 }
 0x159   :  { %286 = vmatmul.f32.gmra.mxu1 %v1182_v59 }
 0x161   :  { %289 = vmatmul.f32.gmra.mxu1 %v1188_v1 }
 0x169   :  { %292 = vmatmul.f32.gmra.mxu1 %v1194_v7 }
 0x171   :  { %295 = vmatmul.f32.gmra.mxu1 %v1200_v11 }
 0x19e   :  { %v266_v17 = vpop.f32.mrf.mxu1 }
 0x19f   :  { %v267_v18 = vadd.f32 %v857_v16, %v266_v17 }
 0x1a1   :  { %v314_v19 = vmax.f32 %v267_v18, 0.0 }
 0x1a3   :  { %363 = vmatmul.f32.vlgmr.msrb.gmra.mxu2 %v314_v19 }
 0x1a4   :  { %v299_v46 = vpop.f32.mrf.mxu3 }
 0x1a5   :  { %v300_v62 = vadd.f32 %v857_v16, %v299_v46  ;;  %v497_v46 = vld [vmem:[#allocation10 + $0x90] sm:$0xff] }
 0x1a6   :  { %v269_v20 = vpop.f32.mrf.mxu1 }
 0x1a7   :  { %v270_v21 = vadd.f32 %v857_v16, %v269_v20  ;;  %v325_v63 = vmax.f32 %v300_v62, 0.0 }
 0x1a9   :  { %v315_v22 = vmax.f32 %v270_v21, 0.0 }
 0x1ab   :  { %366 = vmatmul.f32.gmra.mxu2 %v315_v22 }
 0x1ac   :  { %v302_v60 = vpop.f32.mrf.mxu3 }
 0x1ad   :  { %v303_v0 = vadd.f32 %v857_v16, %v302_v60 }
 0x1ae   :  { %v272_v23 = vpop.f32.mrf.mxu1 }
 0x1af   :  { %v273_v24 = vadd.f32 %v857_v16, %v272_v23  ;;  %v326_v4 = vmax.f32 %v303_v0, 0.0 }
 0x1b1   :  { %v316_v25 = vmax.f32 %v273_v24, 0.0 }
 0x1b3   :  { %369 = vmatmul.f32.gmra.mxu2 %v316_v25 }
 0x1b4   :  { %v305_v2 = vpop.f32.mrf.mxu3 }
 0x1b5   :  { %v306_v5 = vadd.f32 %v857_v16, %v305_v2 }
 0x1b6   :  { %v275_v26 = vpop.f32.mrf.mxu1 }
 0x1b7   :  { %v276_v27 = vadd.f32 %v857_v16, %v275_v26  ;;  %v327_v8 = vmax.f32 %v306_v5, 0.0 }
 0x1b9   :  { %v317_v28 = vmax.f32 %v276_v27, 0.0 }
 0x1bb   :  { %372 = vmatmul.f32.gmra.mxu2 %v317_v28 }
 0x1bc   :  { %v308_v6 = vpop.f32.mrf.mxu3 }
 0x1bd   :  { %v309_v10 = vadd.f32 %v857_v16, %v308_v6 }
 0x1be   :  { %v278_v29 = vpop.f32.mrf.mxu1 }
 0x1bf   :  { %v279_v30 = vadd.f32 %v857_v16, %v278_v29  ;;  %v328_v13 = vmax.f32 %v309_v10, 0.0 }
 0x1c1   :  { %v318_v31 = vmax.f32 %v279_v30, 0.0 }
 0x1c3   :  { %375 = vmatmul.f32.gmra.mxu2 %v318_v31 }
 0x1c4   :  { %v311_v14 = vpop.f32.mrf.mxu3 }
 0x1c5   :  { %v312_v15 = vadd.f32 %v857_v16, %v311_v14 }
 0x1c6   :  { %v281_v32 = vpop.f32.mrf.mxu1 }
 0x1c7   :  { %v282_v33 = vadd.f32 %v857_v16, %v281_v32  ;;  %v329_v17 = vmax.f32 %v312_v15, 0.0 }
 0x1c9   :  { %v319_v34 = vmax.f32 %v282_v33, 0.0 }
 0x1cb   :  { %378 = vmatmul.f32.gmra.mxu2 %v319_v34  ;;  %v509_v34 = vld [vmem:[#allocation10 + $0xf0] sm:$0xff] }
 0x1ce   :  { %v284_v35 = vpop.f32.mrf.mxu1 }
 0x1cf   :  { %v285_v36 = vadd.f32 %v857_v16, %v284_v35  ;;  %v508_v35 = vld [vmem:[#allocation10 + $0xe8] sm:$0xff] }
 0x1d1   :  { %v320_v37 = vmax.f32 %v285_v36, 0.0  ;;  %v507_v36 = vld [vmem:[#allocation10 + $0xe0] sm:$0xff] }
 0x1d3   :  { %381 = vmatmul.f32.gmra.mxu2 %v320_v37  ;;  %v506_v37 = vld [vmem:[#allocation10 + $0xd8] sm:$0xff] }
 0x1d6   :  { %v287_v38 = vpop.f32.mrf.mxu1 }
 0x1d7   :  { %v288_v39 = vadd.f32 %v857_v16, %v287_v38  ;;  %v505_v38 = vld [vmem:[#allocation10 + $0xd0] sm:$0xff] }
 0x1d9   :  { %v321_v40 = vmax.f32 %v288_v39, 0.0  ;;  %v504_v39 = vld [vmem:[#allocation10 + $0xc8] sm:$0xff] }
 0x1db   :  { %384 = vmatmul.f32.gmra.mxu2 %v321_v40  ;;  %v503_v40 = vld [vmem:[#allocation10 + $0xc0] sm:$0xff] }
 0x1de   :  { %v290_v41 = vpop.f32.mrf.mxu1 }
 0x1df   :  { %v291_v42 = vadd.f32 %v857_v16, %v290_v41  ;;  %v502_v41 = vld [vmem:[#allocation10 + $0xb8] sm:$0xff] }
 0x1e1   :  { %v322_v43 = vmax.f32 %v291_v42, 0.0  ;;  %v501_v42 = vld [vmem:[#allocation10 + $0xb0] sm:$0xff] }
 0x1e3   :  { %387 = vmatmul.f32.gmra.mxu2 %v322_v43  ;;  %v500_v43 = vld [vmem:[#allocation10 + $0xa8] sm:$0xff] }
 0x1e6   :  { %v293_v44 = vpop.f32.mrf.mxu1 }
 0x1e7   :  { %v294_v45 = vadd.f32 %v857_v16, %v293_v44  ;;  %v499_v44 = vld [vmem:[#allocation10 + $0xa0] sm:$0xff] }
 0x1e9   :  { %v323_v47 = vmax.f32 %v294_v45, 0.0  ;;  %v498_v45 = vld [vmem:[#allocation10 + $0x98] sm:$0xff] }
 0x1eb   :  { %390 = vmatmul.f32.gmra.mxu2 %v323_v47  ;;  %v496_v47 = vld [vmem:[#allocation10 + $0x88] sm:$0xff] }
 0x1ee   :  { %v296_v56 = vpop.f32.mrf.mxu1 }
 0x1ef   :  { %v297_v57 = vadd.f32 %v857_v16, %v296_v56  ;;  %v510_v16 = vld [vmem:[#allocation10 + $0xf8] sm:$0xff]  ;;  %v495_v56 = vld [vmem:[#allocation10 + $0x80] sm:$0xff] }
 0x1f0   :  { %512 = vmatpush.msrb.mxu0 %v510_v16 }
 0x1f1   :  { %v324_v58 = vmax.f32 %v297_v57, 0.0  ;;  %v858_v57 = vld [vmem:[#allocation13 + $0x1] ss:$0 sm:$0xff] }
 0x1f2   :  { %513 = vmatpush.msrb.mxu0 %v509_v34 }
 0x1f3   :  { %393 = vmatmul.f32.gmra.mxu2 %v324_v58 }
 0x1f4   :  { %514 = vmatpush.msrb.mxu0 %v508_v35 }
 0x1f6   :  { %515 = vmatpush.msrb.mxu0 %v507_v36 }
 0x1f8   :  { %516 = vmatpush.msrb.mxu0 %v506_v37 }
 0x1fa   :  { %517 = vmatpush.msrb.mxu0 %v505_v38 }
 0x1fb   :  { %396 = vmatmul.f32.gmra.mxu2 %v325_v63 }
 0x1fc   :  { %518 = vmatpush.msrb.mxu0 %v504_v39 }
 0x1fe   :  { %519 = vmatpush.msrb.mxu0 %v503_v40 }
 0x200   :  { %520 = vmatpush.msrb.mxu0 %v502_v41 }
 0x202   :  { %521 = vmatpush.msrb.mxu0 %v501_v42 }
 0x203   :  { %399 = vmatmul.f32.gmra.mxu2 %v326_v4 }
 0x204   :  { %522 = vmatpush.msrb.mxu0 %v500_v43 }
 0x206   :  { %523 = vmatpush.msrb.mxu0 %v499_v44 }
 0x208   :  { %524 = vmatpush.msrb.mxu0 %v498_v45 }
 0x20a   :  { %525 = vmatpush.msrb.mxu0 %v497_v46 }
 0x20b   :  { %402 = vmatmul.f32.gmra.mxu2 %v327_v8 }
 0x20c   :  { %526 = vmatpush.msrb.mxu0 %v496_v47 }
 0x20e   :  { %527 = vmatpush.msrb.mxu0 %v495_v56 }
 0x213   :  { %405 = vmatmul.f32.gmra.mxu2 %v328_v13 }
 0x21b   :  { %408 = vmatmul.f32.gmra.mxu2 %v329_v17 }
 0x226   :  { %v364_v18 = vpop.f32.mrf.mxu2 }
 0x22e   :  { %v367_v19 = vpop.f32.mrf.mxu2 }
 0x236   :  { %v370_v20 = vpop.f32.mrf.mxu2 }
 0x23e   :  { %v373_v21 = vpop.f32.mrf.mxu2 }
 0x246   :  { %v376_v22 = vpop.f32.mrf.mxu2 }
 0x24e   :  { %v379_v23 = vpop.f32.mrf.mxu2 }
 0x256   :  { %v382_v24 = vpop.f32.mrf.mxu2 }
 0x25e   :  { %v385_v25 = vpop.f32.mrf.mxu2 }
 0x266   :  { %v388_v26 = vpop.f32.mrf.mxu2 }
 0x26e   :  { %v391_v27 = vpop.f32.mrf.mxu2 }
 0x276   :  { %v394_v28 = vpop.f32.mrf.mxu2 }
 0x27e   :  { %v397_v29 = vpop.f32.mrf.mxu2 }
 0x286   :  { %v400_v30 = vpop.f32.mrf.mxu2 }
 0x28e   :  { %v403_v31 = vpop.f32.mrf.mxu2 }
 0x296   :  { %v406_v32 = vpop.f32.mrf.mxu2 }
 0x29e   :  { %v409_v33 = vpop.f32.mrf.mxu2 }
 0x29f   :  { %413 = vmatpush.msrb.mxu3 %v409_v33 }
 0x2a1   :  { %414 = vmatpush.msrb.mxu3 %v406_v32 }
 0x2a3   :  { %415 = vmatpush.msrb.mxu3 %v403_v31 }
 0x2a5   :  { %416 = vmatpush.msrb.mxu3 %v400_v30 }
 0x2a7   :  { %417 = vmatpush.msrb.mxu3 %v397_v29 }
 0x2a9   :  { %418 = vmatpush.msrb.mxu3 %v394_v28 }
 0x2ab   :  { %419 = vmatpush.msrb.mxu3 %v391_v27 }
 0x2ad   :  { %420 = vmatpush.msrb.mxu3 %v388_v26 }
 0x2af   :  { %421 = vmatpush.msrb.mxu3 %v385_v25 }
 0x2b1   :  { %422 = vmatpush.msrb.mxu3 %v382_v24 }
 0x2b3   :  { %423 = vmatpush.msrb.mxu3 %v379_v23 }
 0x2b5   :  { %424 = vmatpush.msrb.mxu3 %v376_v22 }
 0x2b7   :  { %425 = vmatpush.msrb.mxu3 %v373_v21 }
 0x2b9   :  { %426 = vmatpush.msrb.mxu3 %v370_v20 }
 0x2bb   :  { %427 = vmatpush.msrb.mxu3 %v367_v19 }
 0x2bd   :  { %428 = vmatpush.msrb.mxu3 %v364_v18 }
 0x2be   :  { %429 = vmatmul.f32.vlgmr.msrb.gmra.mxu3 %v1158_v48 }
 0x2c6   :  { %432 = vmatmul.f32.gmra.mxu3 %v1161_v49 }
 0x2ce   :  { %435 = vmatmul.f32.gmra.mxu3 %v1164_v50 }
 0x2d6   :  { %438 = vmatmul.f32.gmra.mxu3 %v1167_v51 }
 0x2de   :  { %441 = vmatmul.f32.gmra.mxu3 %v1170_v52 }
 0x2e6   :  { %444 = vmatmul.f32.gmra.mxu3 %v1173_v53 }
 0x2ee   :  { %447 = vmatmul.f32.gmra.mxu3 %v1176_v54 }
 0x2f6   :  { %450 = vmatmul.f32.gmra.mxu3 %v1182_v59 }
 0x2fe   :  { %453 = vmatmul.f32.gmra.mxu3 %v1188_v1 }
 0x306   :  { %456 = vmatmul.f32.gmra.mxu3 %v1194_v7 }
 0x30e   :  { %459 = vmatmul.f32.gmra.mxu3 %v1200_v11 }
 0x316   :  { %462 = vmatmul.f32.gmra.mxu3 %v1179_v55 }
 0x31e   :  { %465 = vmatmul.f32.gmra.mxu3 %v1184_v61 }
 0x326   :  { %468 = vmatmul.f32.gmra.mxu3 %v1190_v3 }
 0x32e   :  { %471 = vmatmul.f32.gmra.mxu3 %v1196_v9 }
 0x336   :  { %474 = vmatmul.f32.gmra.mxu3 %v1202_v12 }
 0x341   :  { %v430_v58 = vpop.f32.mrf.mxu3 }
 0x342   :  { %v431_v60 = vadd.f32 %v858_v57, %v430_v58 }
 0x344   :  { %v478_v62 = vmax.f32 %v431_v60, 0.0 }
 0x346   :  { %528 = vmatmul.f32.vlgmr.msrb.gmra.mxu0 %v478_v62 }
 0x349   :  { %v433_v63 = vpop.f32.mrf.mxu3 }
 0x34a   :  { %v434_v0 = vadd.f32 %v858_v57, %v433_v63 }
 0x34c   :  { %v479_v2 = vmax.f32 %v434_v0, 0.0 }
 0x34e   :  { %531 = vmatmul.f32.gmra.mxu0 %v479_v2 }
 0x351   :  { %v436_v4 = vpop.f32.mrf.mxu3 }
 0x352   :  { %v437_v5 = vadd.f32 %v858_v57, %v436_v4 }
 0x354   :  { %v480_v6 = vmax.f32 %v437_v5, 0.0 }
 0x356   :  { %534 = vmatmul.f32.gmra.mxu0 %v480_v6 }
 0x359   :  { %v439_v8 = vpop.f32.mrf.mxu3 }
 0x35a   :  { %v440_v10 = vadd.f32 %v858_v57, %v439_v8 }
 0x35c   :  { %v481_v13 = vmax.f32 %v440_v10, 0.0 }
 0x35e   :  { %537 = vmatmul.f32.gmra.mxu0 %v481_v13 }
 0x361   :  { %v442_v14 = vpop.f32.mrf.mxu3 }
 0x362   :  { %v443_v15 = vadd.f32 %v858_v57, %v442_v14 }
 0x364   :  { %v482_v17 = vmax.f32 %v443_v15, 0.0 }
 0x366   :  { %540 = vmatmul.f32.gmra.mxu0 %v482_v17 }
 0x369   :  { %v445_v18 = vpop.f32.mrf.mxu3 }
 0x36a   :  { %v446_v19 = vadd.f32 %v858_v57, %v445_v18 }
 0x36c   :  { %v483_v20 = vmax.f32 %v446_v19, 0.0 }
 0x36e   :  { %543 = vmatmul.f32.gmra.mxu0 %v483_v20 }
 0x371   :  { %v448_v21 = vpop.f32.mrf.mxu3 }
 0x372   :  { %v449_v22 = vadd.f32 %v858_v57, %v448_v21  ;;  %v680_v21 = vld [vmem:[#allocation10 + $0x178] sm:$0xff] }
 0x373   :  { %683 = vmatpush.msra.mxu3 %v680_v21 }
 0x374   :  { %v484_v23 = vmax.f32 %v449_v22, 0.0  ;;  %v679_v22 = vld [vmem:[#allocation10 + $0x170] sm:$0xff] }
 0x375   :  { %684 = vmatpush.msra.mxu3 %v679_v22  ;;  %v862_v22 = vld [vmem:[#allocation13 + $0x5] ss:$0 sm:$0xff] }
 0x376   :  { %546 = vmatmul.f32.gmra.mxu0 %v484_v23 }
 0x379   :  { %v451_v24 = vpop.f32.mrf.mxu3 }
 0x37a   :  { %v452_v25 = vadd.f32 %v858_v57, %v451_v24  ;;  %v678_v24 = vld [vmem:[#allocation10 + $0x168] sm:$0xff] }
 0x37b   :  { %685 = vmatpush.msra.mxu3 %v678_v24 }
 0x37c   :  { %v485_v26 = vmax.f32 %v452_v25, 0.0 }
 0x37e   :  { %549 = vmatmul.f32.gmra.mxu0 %v485_v26  ;;  %v677_v26 = vld [vmem:[#allocation10 + $0x160] sm:$0xff] }
 0x37f   :  { %686 = vmatpush.msra.mxu3 %v677_v26  ;;  %v759_v26 = vld [vmem:[#allocation11 + $0x18] sm:$0xff] }
 0x381   :  { %v454_v27 = vpop.f32.mrf.mxu3 }
 0x382   :  { %v455_v28 = vadd.f32 %v858_v57, %v454_v27 }
 0x384   :  { %v486_v29 = vmax.f32 %v455_v28, 0.0  ;;  %v676_v28 = vld [vmem:[#allocation10 + $0x158] sm:$0xff] }
 0x385   :  { %687 = vmatpush.msra.mxu3 %v676_v28  ;;  %v757_v28 = vld [vmem:[#allocation11 + $0x8] sm:$0xff] }
 0x386   :  { %552 = vmatmul.f32.gmra.mxu0 %v486_v29 }
 0x389   :  { %v457_v30 = vpop.f32.mrf.mxu3 }
 0x38a   :  { %v458_v31 = vadd.f32 %v858_v57, %v457_v30  ;;  %v675_v30 = vld [vmem:[#allocation10 + $0x150] sm:$0xff] }
 0x38b   :  { %688 = vmatpush.msra.mxu3 %v675_v30  ;;  %v863_v30 = vld [vmem:[#allocation13 + $0x6] ss:$0 sm:$0xff] }
 0x38c   :  { %v487_v32 = vmax.f32 %v458_v31, 0.0 }
 0x38e   :  { %555 = vmatmul.f32.gmra.mxu0 %v487_v32  ;;  %v674_v32 = vld [vmem:[#allocation10 + $0x148] sm:$0xff] }
 0x38f   :  { %689 = vmatpush.msra.mxu3 %v674_v32 }
 0x391   :  { %v460_v33 = vpop.f32.mrf.mxu3 }
 0x392   :  { %v461_v16 = vadd.f32 %v858_v57, %v460_v33 }
 0x394   :  { %v488_v34 = vmax.f32 %v461_v16, 0.0  ;;  %v673_v16 = vld [vmem:[#allocation10 + $0x140] sm:$0xff] }
 0x395   :  { %690 = vmatpush.msra.mxu3 %v673_v16 }
 0x396   :  { %558 = vmatmul.f32.gmra.mxu0 %v488_v34 }
 0x399   :  { %v463_v35 = vpop.f32.mrf.mxu3 }
 0x39a   :  { %v464_v36 = vadd.f32 %v858_v57, %v463_v35  ;;  %v672_v35 = vld [vmem:[#allocation10 + $0x138] sm:$0xff] }
 0x39b   :  { %691 = vmatpush.msra.mxu3 %v672_v35 }
 0x39c   :  { %v489_v37 = vmax.f32 %v464_v36, 0.0 }
 0x39e   :  { %561 = vmatmul.f32.gmra.mxu0 %v489_v37  ;;  %v671_v37 = vld [vmem:[#allocation10 + $0x130] sm:$0xff] }
 0x39f   :  { %692 = vmatpush.msra.mxu3 %v671_v37  ;;  %v866_v37 = vld [vmem:[#allocation13 + $0x9] ss:$0 sm:$0xff] }
 0x3a1   :  { %v466_v38 = vpop.f32.mrf.mxu3 }
 0x3a2   :  { %v467_v39 = vadd.f32 %v858_v57, %v466_v38 }
 0x3a4   :  { %v490_v40 = vmax.f32 %v467_v39, 0.0  ;;  %v670_v39 = vld [vmem:[#allocation10 + $0x128] sm:$0xff] }
 0x3a5   :  { %693 = vmatpush.msra.mxu3 %v670_v39 }
 0x3a6   :  { %564 = vmatmul.f32.gmra.mxu0 %v490_v40 }
 0x3a9   :  { %v469_v41 = vpop.f32.mrf.mxu3 }
 0x3aa   :  { %v470_v42 = vadd.f32 %v858_v57, %v469_v41  ;;  %v669_v41 = vld [vmem:[#allocation10 + $0x120] sm:$0xff] }
 0x3ab   :  { %694 = vmatpush.msra.mxu3 %v669_v41 }
 0x3ac   :  { %v491_v43 = vmax.f32 %v470_v42, 0.0 }
 0x3ae   :  { %567 = vmatmul.f32.gmra.mxu0 %v491_v43  ;;  %v668_v43 = vld [vmem:[#allocation10 + $0x118] sm:$0xff] }
 0x3af   :  { %695 = vmatpush.msra.mxu3 %v668_v43 }
 0x3b1   :  { %v472_v44 = vpop.f32.mrf.mxu3 }
 0x3b2   :  { %v473_v45 = vadd.f32 %v858_v57, %v472_v44 }
 0x3b4   :  { %v492_v46 = vmax.f32 %v473_v45, 0.0  ;;  %v667_v45 = vld [vmem:[#allocation10 + $0x110] sm:$0xff] }
 0x3b5   :  { %696 = vmatpush.msra.mxu3 %v667_v45 }
 0x3b6   :  { %570 = vmatmul.f32.gmra.mxu0 %v492_v46 }
 0x3b9   :  { %v475_v47 = vpop.f32.mrf.mxu3 }
 0x3ba   :  { %v476_v56 = vadd.f32 %v858_v57, %v475_v47  ;;  %v859_v57 = vld [vmem:[#allocation13 + $0x2] ss:$0 sm:$0xff]  ;;  %v666_v47 = vld [vmem:[#allocation10 + $0x108] sm:$0xff] }
 0x3bb   :  { %697 = vmatpush.msra.mxu3 %v666_v47 }
 0x3bc   :  { %v493_v58 = vmax.f32 %v476_v56, 0.0 }
 0x3be   :  { %573 = vmatmul.f32.gmra.mxu0 %v493_v58  ;;  %v665_v58 = vld [vmem:[#allocation10 + $0x100] sm:$0xff] }
 0x3bf   :  { %698 = vmatpush.msra.mxu3 %v665_v58 }
 0x3c3   :  { %v529_v60 = vpop.f32.mrf.mxu0 }
 0x3cb   :  { %v532_v62 = vpop.f32.mrf.mxu0 }
 0x3d3   :  { %v535_v63 = vpop.f32.mrf.mxu0 }
 0x3db   :  { %v538_v0 = vpop.f32.mrf.mxu0 }
 0x3e3   :  { %v541_v2 = vpop.f32.mrf.mxu0 }
 0x3eb   :  { %v544_v4 = vpop.f32.mrf.mxu0 }
 0x3f3   :  { %v547_v5 = vpop.f32.mrf.mxu0 }
 0x3fb   :  { %v550_v6 = vpop.f32.mrf.mxu0 }
 0x403   :  { %v553_v8 = vpop.f32.mrf.mxu0 }
 0x40b   :  { %v556_v10 = vpop.f32.mrf.mxu0 }
 0x413   :  { %v559_v13 = vpop.f32.mrf.mxu0 }
 0x41b   :  { %v562_v14 = vpop.f32.mrf.mxu0 }
 0x423   :  { %v565_v15 = vpop.f32.mrf.mxu0 }
 0x42b   :  { %v568_v17 = vpop.f32.mrf.mxu0 }
 0x433   :  { %v571_v18 = vpop.f32.mrf.mxu0 }
 0x43b   :  { %v574_v19 = vpop.f32.mrf.mxu0 }
 0x43c   :  { %578 = vmatpush.msrb.mxu1 %v574_v19  ;;  %v714_v19 = vld [vmem:[#allocation10 + $0x198] sm:$0xff] }
 0x43e   :  { %579 = vmatpush.msrb.mxu1 %v571_v18  ;;  %v715_v18 = vld [vmem:[#allocation10 + $0x1a0] sm:$0xff] }
 0x440   :  { %580 = vmatpush.msrb.mxu1 %v568_v17 }
 0x442   :  { %581 = vmatpush.msrb.mxu1 %v565_v15  ;;  %v716_v15 = vld [vmem:[#allocation10 + $0x1a8] sm:$0xff] }
 0x444   :  { %582 = vmatpush.msrb.mxu1 %v562_v14  ;;  %v717_v14 = vld [vmem:[#allocation10 + $0x1b0] sm:$0xff] }
 0x446   :  { %583 = vmatpush.msrb.mxu1 %v559_v13  ;;  %v718_v13 = vld [vmem:[#allocation10 + $0x1b8] sm:$0xff] }
 0x448   :  { %584 = vmatpush.msrb.mxu1 %v556_v10  ;;  %v719_v10 = vld [vmem:[#allocation10 + $0x1c0] sm:$0xff] }
 0x44a   :  { %585 = vmatpush.msrb.mxu1 %v553_v8  ;;  %v720_v8 = vld [vmem:[#allocation10 + $0x1c8] sm:$0xff] }
 0x44c   :  { %586 = vmatpush.msrb.mxu1 %v550_v6  ;;  %v721_v6 = vld [vmem:[#allocation10 + $0x1d0] sm:$0xff] }
 0x44e   :  { %587 = vmatpush.msrb.mxu1 %v547_v5  ;;  %v722_v5 = vld [vmem:[#allocation10 + $0x1d8] sm:$0xff] }
 0x450   :  { %588 = vmatpush.msrb.mxu1 %v544_v4  ;;  %v723_v4 = vld [vmem:[#allocation10 + $0x1e0] sm:$0xff] }
 0x452   :  { %589 = vmatpush.msrb.mxu1 %v541_v2  ;;  %v724_v2 = vld [vmem:[#allocation10 + $0x1e8] sm:$0xff] }
 0x454   :  { %590 = vmatpush.msrb.mxu1 %v538_v0  ;;  %v725_v0 = vld [vmem:[#allocation10 + $0x1f0] sm:$0xff] }
 0x456   :  { %591 = vmatpush.msrb.mxu1 %v535_v63  ;;  %v726_v63 = vld [vmem:[#allocation10 + $0x1f8] sm:$0xff] }
 0x458   :  { %592 = vmatpush.msrb.mxu1 %v532_v62  ;;  %v643_v62 = vld [vmem:[#allocation5] sm:$0xff] }
 0x45a   :  { %593 = vmatpush.msrb.mxu1 %v529_v60 }
 0x45b   :  { %594 = vmatmul.f32.vlgmr.msrb.gmra.mxu1 %v1158_v48 }
 0x463   :  { %597 = vmatmul.f32.gmra.mxu1 %v1161_v49 }
 0x46b   :  { %600 = vmatmul.f32.gmra.mxu1 %v1164_v50 }
 0x473   :  { %603 = vmatmul.f32.gmra.mxu1 %v1167_v51 }
 0x47b   :  { %606 = vmatmul.f32.gmra.mxu1 %v1170_v52 }
 0x483   :  { %609 = vmatmul.f32.gmra.mxu1 %v1173_v53 }
 0x48b   :  { %612 = vmatmul.f32.gmra.mxu1 %v1176_v54 }
 0x493   :  { %615 = vmatmul.f32.gmra.mxu1 %v1182_v59 }
 0x49b   :  { %618 = vmatmul.f32.gmra.mxu1 %v1188_v1 }
 0x4a3   :  { %621 = vmatmul.f32.gmra.mxu1 %v1194_v7 }
 0x4ab   :  { %624 = vmatmul.f32.gmra.mxu1 %v1200_v11 }
 0x4b3   :  { %627 = vmatmul.f32.gmra.mxu1 %v1179_v55 }
 0x4bb   :  { %630 = vmatmul.f32.gmra.mxu1 %v1184_v61 }
 0x4c3   :  { %633 = vmatmul.f32.gmra.mxu1 %v1190_v3 }
 0x4cb   :  { %636 = vmatmul.f32.gmra.mxu1 %v1196_v9 }
 0x4d3   :  { %639 = vmatmul.f32.gmra.mxu1 %v1202_v12 }
 0x4d8   :  { %v1238_v48 = vpop.f32.mrf.mxu1 }
 0x4d9   :  { %v596_v60 = vadd.f32 %v859_v57, %v1238_v48  ;;  %v713_v48 = vld [vmem:[#allocation10 + $0x190] sm:$0xff] }
 0x4e0   :  { %v1240_v49 = vpop.f32.mrf.mxu1 }
 0x4e1   :  { %v599_v56 = vadd.f32 %v859_v57, %v1240_v49  ;;  %v712_v49 = vld [vmem:[#allocation10 + $0x188] sm:$0xff] }
 0x4e8   :  { %v1242_v50 = vpop.f32.mrf.mxu1 }
 0x4e9   :  { %v602_v46 = vadd.f32 %v859_v57, %v1242_v50  ;;  %v711_v50 = vld [vmem:[#allocation10 + $0x180] sm:$0xff] }
 0x4f0   :  { %v604_v51 = vpop.f32.mrf.mxu1 }
 0x4f1   :  { %v605_v44 = vadd.f32 %v859_v57, %v604_v51  ;;  %v771_v51 = vld [vmem:[#allocation11 + $0x78] sm:$0xff] }
 0x4f2   :  { %774 = vmatpush.msrb.mxu3 %v771_v51 }
 0x4f8   :  { %v607_v52 = vpop.f32.mrf.mxu1 }
 0x4f9   :  { %v608_v42 = vadd.f32 %v859_v57, %v607_v52  ;;  %v770_v52 = vld [vmem:[#allocation11 + $0x70] sm:$0xff] }
 0x4fa   :  { %775 = vmatpush.msrb.mxu3 %v770_v52 }
 0x500   :  { %v610_v53 = vpop.f32.mrf.mxu1 }
 0x501   :  { %v611_v40 = vadd.f32 %v859_v57, %v610_v53  ;;  %v769_v53 = vld [vmem:[#allocation11 + $0x68] sm:$0xff] }
 0x502   :  { %776 = vmatpush.msrb.mxu3 %v769_v53 }
 0x508   :  { %v613_v54 = vpop.f32.mrf.mxu1 }
 0x509   :  { %v614_v38 = vadd.f32 %v859_v57, %v613_v54  ;;  %v768_v54 = vld [vmem:[#allocation11 + $0x60] sm:$0xff] }
 0x50a   :  { %777 = vmatpush.msrb.mxu3 %v768_v54 }
 0x510   :  { %v616_v59 = vpop.f32.mrf.mxu1 }
 0x511   :  { %v617_v36 = vadd.f32 %v859_v57, %v616_v59  ;;  %v767_v59 = vld [vmem:[#allocation11 + $0x58] sm:$0xff] }
 0x512   :  { %778 = vmatpush.msrb.mxu3 %v767_v59 }
 0x518   :  { %v619_v55 = vpop.f32.mrf.mxu1 }
 0x519   :  { %v620_v34 = vadd.f32 %v859_v57, %v619_v55  ;;  %v766_v55 = vld [vmem:[#allocation11 + $0x50] sm:$0xff] }
 0x51a   :  { %779 = vmatpush.msrb.mxu3 %v766_v55 }
 0x520   :  { %v622_v1 = vpop.f32.mrf.mxu1 }
 0x521   :  { %v623_v33 = vadd.f32 %v859_v57, %v622_v1  ;;  %v765_v1 = vld [vmem:[#allocation11 + $0x48] sm:$0xff] }
 0x522   :  { %780 = vmatpush.msrb.mxu3 %v765_v1 }
 0x528   :  { %v625_v61 = vpop.f32.mrf.mxu1 }
 0x529   :  { %v626_v31 = vadd.f32 %v859_v57, %v625_v61  ;;  %v764_v61 = vld [vmem:[#allocation11 + $0x40] sm:$0xff] }
 0x52a   :  { %781 = vmatpush.msrb.mxu3 %v764_v61 }
 0x530   :  { %v628_v7 = vpop.f32.mrf.mxu1 }
 0x531   :  { %v629_v29 = vadd.f32 %v859_v57, %v628_v7  ;;  %v763_v7 = vld [vmem:[#allocation11 + $0x38] sm:$0xff] }
 0x532   :  { %782 = vmatpush.msrb.mxu3 %v763_v7 }
 0x538   :  { %v631_v3 = vpop.f32.mrf.mxu1 }
 0x539   :  { %v632_v27 = vadd.f32 %v859_v57, %v631_v3  ;;  %v762_v3 = vld [vmem:[#allocation11 + $0x30] sm:$0xff] }
 0x53a   :  { %783 = vmatpush.msrb.mxu3 %v762_v3 }
 0x540   :  { %v634_v11 = vpop.f32.mrf.mxu1 }
 0x541   :  { %v635_v25 = vadd.f32 %v859_v57, %v634_v11  ;;  %v761_v11 = vld [vmem:[#allocation11 + $0x28] sm:$0xff] }
 0x542   :  { %784 = vmatpush.msrb.mxu3 %v761_v11 }
 0x548   :  { %v637_v9 = vpop.f32.mrf.mxu1 }
 0x549   :  { %v638_v23 = vadd.f32 %v859_v57, %v637_v9  ;;  %v860_v9 = vld [vmem:[#allocation13 + $0x3] ss:$0 sm:$0xff] }
 0x550   :  { %v640_v12 = vpop.f32.mrf.mxu1 }
 0x551   :  { %v641_v20 = vadd.f32 %v859_v57, %v640_v12 }
 0x553   :  { %644 = vmatpush.msra.mxu2 %v641_v20  ;;  %v861_v20 = vld [vmem:[#allocation13 + $0x4] ss:$0 sm:$0xff] }
 0x555   :  { %645 = vmatpush.msra.mxu2 %v638_v23 }
 0x557   :  { %646 = vmatpush.msra.mxu2 %v635_v25  ;;  %v760_v25 = vld [vmem:[#allocation11 + $0x20] sm:$0xff] }
 0x558   :  { %785 = vmatpush.msrb.mxu3 %v760_v25 }
 0x559   :  { %647 = vmatpush.msra.mxu2 %v632_v27  ;;  %v758_v27 = vld [vmem:[#allocation11 + $0x10] sm:$0xff] }
 0x55a   :  { %786 = vmatpush.msrb.mxu3 %v759_v26 }
 0x55b   :  { %648 = vmatpush.msra.mxu2 %v629_v29  ;;  %v756_v29 = vld [vmem:[#allocation11] sm:$0xff] }
 0x55c   :  { %787 = vmatpush.msrb.mxu3 %v758_v27 }
 0x55d   :  { %649 = vmatpush.msra.mxu2 %v626_v31 }
 0x55e   :  { %788 = vmatpush.msrb.mxu3 %v757_v28 }
 0x55f   :  { %650 = vmatpush.msra.mxu2 %v623_v33  ;;  %v864_v33 = vld [vmem:[#allocation13 + $0x7] ss:$0 sm:$0xff] }
 0x560   :  { %789 = vmatpush.msrb.mxu3 %v756_v29 }
 0x561   :  { %651 = vmatpush.msra.mxu2 %v620_v34  ;;  %v865_v34 = vld [vmem:[#allocation13 + $0x8] ss:$0 sm:$0xff] }
 0x563   :  { %652 = vmatpush.msra.mxu2 %v617_v36 }
 0x565   :  { %653 = vmatpush.msra.mxu2 %v614_v38 }
 0x567   :  { %654 = vmatpush.msra.mxu2 %v611_v40 }
 0x569   :  { %655 = vmatpush.msra.mxu2 %v608_v42 }
 0x56b   :  { %656 = vmatpush.msra.mxu2 %v605_v44 }
 0x56d   :  { %657 = vmatpush.msra.mxu2 %v602_v46 }
 0x56f   :  { %658 = vmatpush.msra.mxu2 %v599_v56 }
 0x571   :  { %659 = vmatpush.msra.mxu2 %v596_v60 }
 0x572   :  { %660 = vmatmul.f32.vlgmr.msra.gmra.mxu2 %v643_v62 }
 0x573   :  { %729 = vmatpush.msrb.mxu2 %v726_v63 }
 0x575   :  { %730 = vmatpush.msrb.mxu2 %v725_v0 }
 0x577   :  { %731 = vmatpush.msrb.mxu2 %v724_v2 }
 0x579   :  { %732 = vmatpush.msrb.mxu2 %v723_v4 }
 0x57b   :  { %733 = vmatpush.msrb.mxu2 %v722_v5 }
 0x57d   :  { %734 = vmatpush.msrb.mxu2 %v721_v6 }
 0x57f   :  { %735 = vmatpush.msrb.mxu2 %v720_v8 }
 0x581   :  { %736 = vmatpush.msrb.mxu2 %v719_v10 }
 0x583   :  { %737 = vmatpush.msrb.mxu2 %v718_v13 }
 0x585   :  { %738 = vmatpush.msrb.mxu2 %v717_v14 }
 0x587   :  { %739 = vmatpush.msrb.mxu2 %v716_v15 }
 0x589   :  { %740 = vmatpush.msrb.mxu2 %v715_v18 }
 0x58b   :  { %741 = vmatpush.msrb.mxu2 %v714_v19 }
 0x58d   :  { %742 = vmatpush.msrb.mxu2 %v713_v48 }
 0x58f   :  { %743 = vmatpush.msrb.mxu2 %v712_v49 }
 0x591   :  { %744 = vmatpush.msrb.mxu2 %v711_v50 }
 0x5f5   :  { %v661_v17 = vpop.f32.mrf.mxu2 }
 0x5f6   :  { %699 = vmatmul.f32.vlgmr.msra.gmra.mxu3 %v661_v17 }
 0x679   :  { %v700_v57 = vpop.f32.mrf.mxu3 }
 0x67a   :  { %v701_v12 = vadd.f32 %v860_v9, %v700_v57 }
 0x67c   :  { %v703_v21 = vmax.f32 %v701_v12, 0.0 }
 0x67e   :  { %v706_v23 = vmul.f32 %v861_v20, %v703_v21 }
 0x680   :  { %v709_v24 = vadd.f32 %v862_v22, %v706_v23 }
 0x682   :  { %745 = vmatmul.f32.vlgmr.msrb.gmra.mxu2 %v709_v24 }
 0x705   :  { %v746_v31 = vpop.f32.mrf.mxu2 }
 0x706   :  { %v747_v32 = vadd.f32 %v863_v30, %v746_v31 }
 0x708   :  { %v749_v16 = vmax.f32 %v747_v32, 0.0 }
 0x70a   :  { %v752_v35 = vmul.f32 %v864_v33, %v749_v16 }
 0x70c   :  { %v755_v36 = vadd.f32 %v865_v34, %v752_v35 }
 0x70e   :  { %790 = vmatmul.f32.vlgmr.msrb.gmra.mxu3 %v755_v36 }
 0x791   :  { %v791_v38 = vpop.f32.mrf.mxu3 }
 0x792   :  { %v792_v39 = vadd.f32 %v866_v37, %v791_v38 }
 0x794   :  { %794 = vst [vmem:[#allocation14] sm:$0xff] %v792_v39 }
 0x795   :  { %805 = dma.vmem_to_hbm [thread:$0]  %s801_s9, 128, %s803_s12, [#allocation4]  }
 0x796   :  { %1067 = dma.done.wait [#allocation4], 128  }
 0x797   :  { %1068 = vsyncadd [#allocation4], 4294967168 }
 0x798   :  { %810 = vsyncpa [#allocation3], 1 }
 0x799   :  { %811 = vsyncpa [#allocation6], 1 }
 0x79a   :  { %812 = vsyncpa [#allocation9], 1 }
 0x79b   :  { %813 = vsyncpa [#allocation12], 1 }
 0x79c   :  { %814 = vsyncpa [#allocation4], 1 }

</bundles_post_ra>
